<compile_context>
chip_gen: v6e
topology: v6e:2x2x1
jax: 0.10.0
libtpu: 0.0.40
codegen_flags: <defaults>
</compile_context>

<pallas_src>
from functools import partial
import math

import jax
import jax.numpy as jnp
from jax.experimental import pallas as pl
from jax.experimental.pallas import tpu as pltpu


# -----------------------------------------------------------------------------
# Tiling / padding / compiler-param helpers
# -----------------------------------------------------------------------------
_LANE = 128      # vreg lane width
_SUBLANE = 8     # vreg sublane count
_NEG = -1e30     # "minus infinity" for padded vocab columns (avoids inf-inf)


def _round_up(n, m):
    return ((n + m - 1) // m) * m


def _pick_tile(dim, target, align):
    """Largest multiple of `align` that divides `dim` and is <= `target`;
    falls back to the full dimension (always legal for a BlockSpec)."""
    if dim <= target:
        return dim
    t = (target // align) * align
    while t >= align:
        if dim % t == 0:
            return t
        t -= align
    return dim


def _vmem_capacity():
    try:
        return int(pltpu.get_tpu_info().vmem_capacity_bytes)
    except Exception:
        return 64 * 1024 * 1024       # conservative (v7x-sized) default


_VMEM_CAP = _vmem_capacity()
_BIG_VMEM = _VMEM_CAP >= 100 * 1024 * 1024     # v5e/v6e (128 MiB) vs v7x (64 MiB)


def _compiler_params(dim_sem):
    vmem = min(_VMEM_CAP * 3 // 4, 96 * 1024 * 1024)
    return pltpu.CompilerParams(dimension_semantics=dim_sem,
                                vmem_limit_bytes=vmem)


def _pad_axis(a, axis, new_size):
    old = a.shape[axis]
    if new_size == old:
        return a
    pads = [(0, 0)] * a.ndim
    pads[axis] = (0, new_size - old)
    return jnp.pad(a, pads)


# -----------------------------------------------------------------------------
# Kernel 1: fused  o = x + LayerNorm1(MHSelfAttention(x)), grid=(B, S/tq)
# -----------------------------------------------------------------------------
def _attn_res_ln_kernel(xq_ref, xf_ref, w_ref, g_ref, b_ref, o_ref, *,
                        num_heads, eps):
    S, H = xf_ref.shape[1], xf_ref.shape[2]
    tq = xq_ref.shape[1]
    hd = H // num_heads
    scale = 1.0 / math.sqrt(H)           # reference scales by sqrt(hidden_size)

    xq = xq_ref[0]                        # (tq, H) bf16 — query rows + residual
    xf = xf_ref[0]                        # (S,  H) bf16 — key/value source
    w = w_ref[...]                        # (H, 3H) bf16, columns (qkv, head, hd)

    # Projections: q only for this q-tile, k/v for the full sequence.
    q = jnp.dot(xq, w[:, 0:H], preferred_element_type=jnp.float32)
    q = (q * scale).astype(jnp.bfloat16)              # fold scale, cast early
    kv = jnp.dot(xf, w[:, H:3 * H], preferred_element_type=jnp.float32)
    kv = kv.astype(jnp.bfloat16)                       # (S, 2H)

    # Heads-batched layout (nh, rows, hd) — one dot_general for all heads.
    q3 = jnp.transpose(q.reshape(tq, num_heads, hd), (1, 0, 2))
    k3 = jnp.transpose(kv[:, 0:H].reshape(S, num_heads, hd), (1, 0, 2))
    v3 = jnp.transpose(kv[:, H:2 * H].reshape(S, num_heads, hd), (1, 0, 2))

    s = jnp.einsum('hqd,hkd->hqk', q3, k3,
                   preferred_element_type=jnp.float32)          # (nh, tq, S)
    s = s - jnp.max(s, axis=-1, keepdims=True)
    p = jnp.exp(s)
    p = p * pl.reciprocal(jnp.sum(p, axis=-1, keepdims=True))   # exact recip
    ctx = jnp.einsum('hqk,hkd->hqd', p.astype(jnp.bfloat16), v3,
                     preferred_element_type=jnp.float32)        # (nh, tq, hd)

    attn = jnp.transpose(ctx, (1, 0, 2)).reshape(tq, H)         # (tq, H) f32
    mean = jnp.mean(attn, axis=-1, keepdims=True)
    var = jnp.mean(jnp.square(attn - mean), axis=-1, keepdims=True)
    ln = (attn - mean) * jax.lax.rsqrt(var + eps)
    ln = ln * g_ref[...].astype(jnp.float32) + b_ref[...].astype(jnp.float32)
    # x + LayerNorm(attention(x)) — single lane-dense full-width store.
    o_ref[0] = (xq.astype(jnp.float32) + ln).astype(o_ref.dtype)


def attention_residual_ln_pallas(x, wqkv, gamma, beta, *, num_heads,
                                 eps=1e-5, tq_target=256):
    B, S, H = x.shape
    tq = _pick_tile(S, tq_target, _SUBLANE)
    return pl.pallas_call(
        partial(_attn_res_ln_kernel, num_heads=num_heads, eps=eps),
        out_shape=jax.ShapeDtypeStruct((B, S, H), x.dtype),
        grid=(B, S // tq),
        in_specs=[
            pl.BlockSpec((1, tq, H), lambda b, q: (b, q, 0)),   # query / residual
            pl.BlockSpec((1, S, H), lambda b, q: (b, 0, 0)),    # k/v source (resident over q)
            pl.BlockSpec((H, 3 * H), lambda b, q: (0, 0)),
            pl.BlockSpec((1, H), lambda b, q: (0, 0)),
            pl.BlockSpec((1, H), lambda b, q: (0, 0)),
        ],
        out_specs=pl.BlockSpec((1, tq, H), lambda b, q: (b, q, 0)),
        compiler_params=_compiler_params(("parallel", "parallel")),
    )(x, x, wqkv, gamma.reshape(1, H), beta.reshape(1, H))


# -----------------------------------------------------------------------------
# Kernel 2: fused FFN  o = x + LayerNorm2(ReLU(x@W1+b1)@W2 + b2)
#           grid=(M/tm, I/ti); the (tm, ti) h1 tile never leaves VMEM.
# -----------------------------------------------------------------------------
def _ffn_res_ln_kernel(x_ref, w1_ref, b1_ref, w2_ref, b2_ref, g_ref, beta_ref,
                       o_ref, acc_ref, *, eps):
    @pl.when(pl.program_id(1) == 0)
    def _():
        acc_ref[...] = jnp.zeros_like(acc_ref)

    h = jnp.dot(x_ref[...], w1_ref[...], preferred_element_type=jnp.float32)
    h = jnp.maximum(h + b1_ref[...].astype(jnp.float32), 0.0)
    acc_ref[...] += jnp.dot(h.astype(jnp.bfloat16), w2_ref[...],
                            preferred_element_type=jnp.float32)

    @pl.when(pl.program_id(1) == pl.num_programs(1) - 1)
    def _():
        y = acc_ref[...] + b2_ref[...].astype(jnp.float32)
        mean = jnp.mean(y, axis=-1, keepdims=True)
        var = jnp.mean(jnp.square(y - mean), axis=-1, keepdims=True)
        ln = (y - mean) * jax.lax.rsqrt(var + eps)
        ln = ln * g_ref[...].astype(jnp.float32) + beta_ref[...].astype(jnp.float32)
        o_ref[...] = (x_ref[...].astype(jnp.float32) + ln).astype(o_ref.dtype)


def ffn_residual_ln_pallas(x, w1, b1, w2, b2, gamma, beta, *, eps=1e-5,
                           tm_target=None, ti_target=512):
    B, S, H = x.shape
    M = B * S
    I = w1.shape[1]
    if tm_target is None:
        tm_target = 512 if _BIG_VMEM else 256

    tm = min(tm_target, _round_up(M, _SUBLANE))
    Mp = _round_up(M, tm)
    ti = min(ti_target, _round_up(I, _LANE))
    Ip = _round_up(I, ti)

    # Zero padding of the intermediate dim is exact: ReLU(0)=0, 0 @ W2-rows = 0.
    x2 = _pad_axis(x.reshape(M, H), 0, Mp)
    w1p = _pad_axis(w1, 1, Ip)
    b1p = _pad_axis(b1.reshape(1, I), 1, Ip)
    w2p = _pad_axis(w2, 0, Ip)

    out = pl.pallas_call(
        partial(_ffn_res_ln_kernel, eps=eps),
        out_shape=jax.ShapeDtypeStruct((Mp, H), x.dtype),
        grid=(Mp // tm, Ip // ti),
        in_specs=[
            pl.BlockSpec((tm, H), lambda i, j: (i, 0)),   # x (also the residual)
            pl.BlockSpec((H, ti), lambda i, j: (0, j)),   # W1 slice
            pl.BlockSpec((1, ti), lambda i, j: (0, j)),   # b1 slice
            pl.BlockSpec((ti, H), lambda i, j: (j, 0)),   # W2 slice
            pl.BlockSpec((1, H), lambda i, j: (0, 0)),    # b2
            pl.BlockSpec((1, H), lambda i, j: (0, 0)),    # LN gamma
            pl.BlockSpec((1, H), lambda i, j: (0, 0)),    # LN beta
        ],
        out_specs=pl.BlockSpec((tm, H), lambda i, j: (i, 0)),
        scratch_shapes=[pltpu.VMEM((tm, H), jnp.float32)],
        compiler_params=_compiler_params(("parallel", "arbitrary")),
    )(x2, w1p, b1p, w2p, b2.reshape(1, H), gamma.reshape(1, H),
      beta.reshape(1, H))
    return out[:M].reshape(B, S, H)


# -----------------------------------------------------------------------------
# Kernel 3: LM head + fused MLM loss pieces.
#   grid=(M/tm, V/tn, H/tk); logits written once; online logsumexp across
#   vocab tiles + label-logit gather produce per-row NLL (no extra HBM passes).
# -----------------------------------------------------------------------------
def _lmhead_loss_kernel(x_ref, w_ref, b_ref, lbl_ref, logits_ref, nll_ref,
                        acc_ref, m_ref, l_ref, y_ref):
    j = pl.program_id(1)

    @pl.when(pl.program_id(2) == 0)
    def _():
        acc_ref[...] = jnp.zeros_like(acc_ref)

    acc_ref[...] += jnp.dot(x_ref[...], w_ref[...],
                            preferred_element_type=jnp.float32)

    @pl.when(pl.program_id(2) == pl.num_programs(2) - 1)
    def _():
        logits = acc_ref[...] + b_ref[...].astype(jnp.float32)
        logits_ref[...] = logits.astype(logits_ref.dtype)

        @pl.when(j == 0)
        def _():
            m_ref[...] = jnp.full_like(m_ref, _NEG)
            l_ref[...] = jnp.zeros_like(l_ref)
            y_ref[...] = jnp.zeros_like(y_ref)

        # Online logsumexp over vocab tiles (padded columns carry a -1e30 bias).
        m_prev = m_ref[...]
        m_new = jnp.maximum(m_prev, jnp.max(logits, axis=-1, keepdims=True))
        l_ref[...] = (l_ref[...] * jnp.exp(m_prev - m_new)
                      + jnp.sum(jnp.exp(logits - m_new), axis=-1, keepdims=True))
        m_ref[...] = m_new

        # Gather the label logit if the label falls inside this vocab tile.
        tm, tn = logits.shape
        col = j * tn + jax.lax.broadcasted_iota(jnp.int32, (tm, tn), 1)
        hit = col == lbl_ref[...]
        y_ref[...] += jnp.sum(jnp.where(hit, logits, 0.0), axis=-1, keepdims=True)

        @pl.when(j == pl.num_programs(1) - 1)
        def _():
            nll_ref[...] = m_ref[...] + jnp.log(l_ref[...]) - y_ref[...]


def lm_head_loss_pallas(x2d, w, b, labels, *, tm_target=None, tn_target=None,
                        tk_target=512):
    M, H = x2d.shape
    V = w.shape[1]
    if tm_target is None:
        tm_target = 512 if _BIG_VMEM else 256
    if tn_target is None:
        tn_target = 1024 if _BIG_VMEM else 512

    tm = min(tm_target, _round_up(M, _SUBLANE)); Mp = _round_up(M, tm)
    tn = min(tn_target, _round_up(V, _LANE));    Vp = _round_up(V, tn)
    tk = min(tk_target, _round_up(H, _LANE));    Kp = _round_up(H, tk)

    xp = _pad_axis(_pad_axis(x2d, 0, Mp), 1, Kp)
    wp = _pad_axis(_pad_axis(w, 0, Kp), 1, Vp)
    bp = b.astype(jnp.float32)
    if Vp > V:
        bp = jnp.concatenate([bp, jnp.full((Vp - V,), _NEG, jnp.float32)])
    bp = bp.reshape(1, Vp)
    lblp = _pad_axis(labels.astype(jnp.int32).reshape(M, 1), 0, Mp)

    logits, nll = pl.pallas_call(
        _lmhead_loss_kernel,
        out_shape=(jax.ShapeDtypeStruct((Mp, Vp), jnp.float32),
                   jax.ShapeDtypeStruct((Mp, 1), jnp.float32)),
        grid=(Mp // tm, Vp // tn, Kp // tk),
        in_specs=[
            pl.BlockSpec((tm, tk), lambda i, j, k: (i, k)),
            pl.BlockSpec((tk, tn), lambda i, j, k: (k, j)),
            pl.BlockSpec((1, tn), lambda i, j, k: (0, j)),
            pl.BlockSpec((tm, 1), lambda i, j, k: (i, 0)),     # labels per row
        ],
        out_specs=(pl.BlockSpec((tm, tn), lambda i, j, k: (i, j)),
                   pl.BlockSpec((tm, 1), lambda i, j, k: (i, 0))),
        scratch_shapes=[pltpu.VMEM((tm, tn), jnp.float32),     # matmul accumulator
                        pltpu.VMEM((tm, 1), jnp.float32),      # running max
                        pltpu.VMEM((tm, 1), jnp.float32),      # running sum-exp
                        pltpu.VMEM((tm, 1), jnp.float32)],     # label logit
        compiler_params=_compiler_params(("parallel", "arbitrary", "arbitrary")),
    )(xp, wp, bp, lblp)
    return logits[:M, :V], nll[:M, 0]


# -----------------------------------------------------------------------------
# Parameters (deterministic synthetic init; weights stored in bf16)
# -----------------------------------------------------------------------------
def init_params(key, cfg):
    H = cfg["hidden_size"]
    V = cfg["vocab_size"]
    P = cfg["max_position_embeddings"]
    I = cfg["intermediate_size"]
    L = cfg["num_hidden_layers"]

    keys = jax.random.split(key, 3 + 3 * L)

    def nrm(k, shape, scale=0.02):
        return (scale * jax.random.normal(k, shape, dtype=jnp.float32)
                ).astype(jnp.bfloat16)

    params = {
        "word_embed": nrm(keys[0], (V, H)),
        "pos_embed": nrm(keys[1], (P, H)),
        "lm_w": nrm(keys[2], (H, V)),
        "lm_b": jnp.zeros((V,), jnp.float32),
        "layers": [],
    }
    idx = 3
    for _ in range(L):
        params["layers"].append({
            "wqkv": nrm(keys[idx], (H, 3 * H)),     # qkv Linear, bias=False
            "ln1_g": jnp.ones((H,), jnp.float32),
            "ln1_b": jnp.zeros((H,), jnp.float32),
            "ln2_g": jnp.ones((H,), jnp.float32),
            "ln2_b": jnp.zeros((H,), jnp.float32),
            "w1": nrm(keys[idx + 1], (H, I)),
            "b1": jnp.zeros((I,), jnp.float32),
            "w2": nrm(keys[idx + 2], (I, H)),
            "b2": jnp.zeros((H,), jnp.float32),
        })
        idx += 3
    return params


# -----------------------------------------------------------------------------
# Model forward (glue in JAX, hot path in Pallas kernels)
# -----------------------------------------------------------------------------
def forward(params, input_ids, attention_mask=None, labels=None, *, num_heads):
    B, S = input_ids.shape
    V, H = params["word_embed"].shape

    # TODO(synk): embedding gather kept as JAX glue (a DMA-gather kernel is not
    # worthwhile at these sizes).  Dropout p=0.0 -> identity.
    x = jnp.take(params["word_embed"], input_ids, axis=0)
    x = x + params["pos_embed"][:S][None, :, :]
    x = x.astype(jnp.bfloat16)                       # (B, S, H)

    for lp in params["layers"]:
        x = attention_residual_ln_pallas(x, lp["wqkv"], lp["ln1_g"], lp["ln1_b"],
                                         num_heads=num_heads)
        x = ffn_residual_ln_pallas(x, lp["w1"], lp["b1"], lp["w2"], lp["b2"],
                                   lp["ln2_g"], lp["ln2_b"])

    lbl = labels if labels is not None else jnp.zeros((B, S), jnp.int32)
    logits2d, nll = lm_head_loss_pallas(x.reshape(B * S, H),
                                        params["lm_w"], params["lm_b"],
                                        lbl.reshape(B * S))
    logits = logits2d.reshape(B, S, V)

    loss = None
    if labels is not None:
        # Masked-LM loss: mean NLL over positions with attention_mask == 1
        # (== F.cross_entropy on the boolean-selected rows, reduction='mean').
        if attention_mask is None:
            attention_mask = jnp.ones((B, S), jnp.int32)
        mask = (attention_mask.reshape(B * S) == 1).astype(jnp.float32)
        loss = jnp.sum(nll * mask) / jnp.maximum(jnp.sum(mask), 1.0)
    return {"loss": loss, "logits": logits}


# -----------------------------------------------------------------------------
# Main
# -----------------------------------------------------------------------------
if __name__ == "__main__":
    cfg = dict(
        vocab_size=96,                 # not a lane multiple -> exercises padding
        hidden_size=64,
        num_attention_heads=4,
        num_hidden_layers=2,
        max_position_embeddings=16,
        intermediate_size=96,          # not a lane multiple -> exercises padding
        hidden_dropout_prob=0.0,
    )

    key = jax.random.PRNGKey(0)
    pkey, ikey, lkey = jax.random.split(key, 3)
    params = init_params(pkey, cfg)

    B, S = 2, 8
    input_ids = jax.random.randint(ikey, (B, S), 0, cfg["vocab_size"], dtype=jnp.int32)
    labels = jax.random.randint(lkey, (B, S), 0, cfg["vocab_size"], dtype=jnp.int32)
    attention_mask = jnp.ones((B, S), jnp.int32).at[:, -1].set(0)

    out = forward(params, input_ids, attention_mask, labels,
                  num_heads=cfg["num_attention_heads"])
    jax.block_until_ready(out["logits"])
    jax.block_until_ready(out["loss"])

    assert out["logits"].shape == (B, S, cfg["vocab_size"])
    assert out["logits"].dtype == jnp.float32
    assert out["loss"].shape == ()
    assert bool(jnp.isfinite(out["loss"]))
    print("KERNEL_OK")
</pallas_src>

<mosaic_0001>
module attributes {stable_mosaic.version = 11 : i64} {
  func.func @_attn_res_ln_kernel(%arg0: i32, %arg1: i32, %arg2: memref<1x8x64xbf16, #tpu.memory_space<vmem>>, %arg3: memref<1x8x64xbf16, #tpu.memory_space<vmem>>, %arg4: memref<64x192xbf16, #tpu.memory_space<vmem>>, %arg5: memref<1x64xf32, #tpu.memory_space<vmem>>, %arg6: memref<1x64xf32, #tpu.memory_space<vmem>>, %arg7: memref<1x8x64xbf16, #tpu.memory_space<vmem>>) attributes {dimension_semantics = [#tpu.dimension_semantics<parallel>, #tpu.dimension_semantics<parallel>], iteration_bounds = array<i64: 2, 1>, scalar_prefetch = 0 : i64, scratch_operands = 0 : i64, tpu.core_type = #tpu.core_type<tc>, window_params = [{transform_indices = @transform_0, window_bounds = array<i64: 1, 8, 64>}, {transform_indices = @transform_1, window_bounds = array<i64: 1, 8, 64>}, {pipeline_mode = #tpu.pipeline_mode<synchronous>, transform_indices = @transform_2, window_bounds = array<i64: 64, 192>}, {pipeline_mode = #tpu.pipeline_mode<synchronous>, transform_indices = @transform_3, window_bounds = array<i64: 1, 64>}, {pipeline_mode = #tpu.pipeline_mode<synchronous>, transform_indices = @transform_4, window_bounds = array<i64: 1, 64>}, {transform_indices = @transform_5, window_bounds = array<i64: 1, 8, 64>}]} {
    %c0 = arith.constant 0 : index
    %c0_0 = arith.constant 0 : index
    %c0_1 = arith.constant 0 : index
    %0 = vector.load %arg2[%c0, %c0_0, %c0_1] : memref<1x8x64xbf16, #tpu.memory_space<vmem>>, vector<1x8x64xbf16>
    %1 = vector.shape_cast %0 : vector<1x8x64xbf16> to vector<8x64xbf16>
    %c0_2 = arith.constant 0 : index
    %c0_3 = arith.constant 0 : index
    %c0_4 = arith.constant 0 : index
    %2 = vector.load %arg3[%c0_2, %c0_3, %c0_4] : memref<1x8x64xbf16, #tpu.memory_space<vmem>>, vector<1x8x64xbf16>
    %3 = vector.shape_cast %2 : vector<1x8x64xbf16> to vector<8x64xbf16>
    %c0_5 = arith.constant 0 : index
    %c0_6 = arith.constant 0 : index
    %4 = vector.load %arg4[%c0_5, %c0_6] : memref<64x192xbf16, #tpu.memory_space<vmem>>, vector<64x192xbf16>
    %5 = vector.extract_strided_slice %4 {offsets = [0, 0], sizes = [64, 64], strides = [1, 1]} : vector<64x192xbf16> to vector<64x64xbf16>
    %cst = arith.constant dense<0.000000e+00> : vector<8x64xf32>
    %6 = tpu.matmul %1, %5, %cst {dimension_numbers = #tpu.dot_dimension_numbers<[1], [0], [0], [1], [0, 0, 1, 1], [], []>} : vector<8x64xbf16>, vector<64x64xbf16>, vector<8x64xf32> -> vector<8x64xf32>
    %cst_7 = arith.constant 1.250000e-01 : f32
    %7 = vector.broadcast %cst_7 : f32 to vector<8x64xf32>
    %8 = arith.mulf %6, %7 : vector<8x64xf32>
    %9 = arith.truncf %8 : vector<8x64xf32> to vector<8x64xbf16>
    %10 = vector.extract_strided_slice %4 {offsets = [0, 64], sizes = [64, 128], strides = [1, 1]} : vector<64x192xbf16> to vector<64x128xbf16>
    %cst_8 = arith.constant dense<0.000000e+00> : vector<8x128xf32>
    %11 = tpu.matmul %3, %10, %cst_8 {dimension_numbers = #tpu.dot_dimension_numbers<[1], [0], [0], [1], [0, 0, 1, 1], [], []>} : vector<8x64xbf16>, vector<64x128xbf16>, vector<8x128xf32> -> vector<8x128xf32>
    %12 = arith.truncf %11 : vector<8x128xf32> to vector<8x128xbf16>
    %13 = vector.shape_cast %9 : vector<8x64xbf16> to vector<8x4x16xbf16>
    %14 = tpu.transpose %13, [1, 0, 2] : vector<8x4x16xbf16> -> vector<4x8x16xbf16>
    %15 = vector.extract_strided_slice %12 {offsets = [0, 0], sizes = [8, 64], strides = [1, 1]} : vector<8x128xbf16> to vector<8x64xbf16>
    %16 = vector.shape_cast %15 : vector<8x64xbf16> to vector<8x4x16xbf16>
    %17 = tpu.transpose %16, [1, 0, 2] : vector<8x4x16xbf16> -> vector<4x8x16xbf16>
    %18 = vector.extract_strided_slice %12 {offsets = [0, 64], sizes = [8, 64], strides = [1, 1]} : vector<8x128xbf16> to vector<8x64xbf16>
    %19 = vector.shape_cast %18 : vector<8x64xbf16> to vector<8x4x16xbf16>
    %20 = tpu.transpose %19, [1, 0, 2] : vector<8x4x16xbf16> -> vector<4x8x16xbf16>
    "tpu.trace_start"() <{level = 10 : i32, message = "hqd,hkd->hqk"}> : () -> ()
    %cst_9 = arith.constant dense<0.000000e+00> : vector<4x8x8xf32>
    %21 = tpu.matmul %14, %17, %cst_9 {dimension_numbers = #tpu.dot_dimension_numbers<[2], [2], [1], [1], [0, 0, 0, 1, 1, 1], [0], [0]>} : vector<4x8x16xbf16>, vector<4x8x16xbf16>, vector<4x8x8xf32> -> vector<4x8x8xf32>
    "tpu.trace_stop"() : () -> ()
    %cst_10 = arith.constant dense<0xFF800000> : vector<4x8xf32>
    %22 = vector.multi_reduction <maximumf>, %21, %cst_10 [2] : vector<4x8x8xf32> to vector<4x8xf32>
    %23 = vector.shape_cast %22 : vector<4x8xf32> to vector<4x8x1xf32>
    %24 = vector.broadcast %23 : vector<4x8x1xf32> to vector<4x8x8xf32>
    %25 = arith.subf %21, %24 : vector<4x8x8xf32>
    %26 = math.exp %25 : vector<4x8x8xf32>
    %cst_11 = arith.constant dense<0.000000e+00> : vector<4x8xf32>
    %27 = vector.multi_reduction <add>, %26, %cst_11 [2] : vector<4x8x8xf32> to vector<4x8xf32>
    %28 = vector.shape_cast %27 : vector<4x8xf32> to vector<4x8x1xf32>
    %29 = tpu.reciprocal %28 : vector<4x8x1xf32> -> vector<4x8x1xf32>
    %30 = vector.broadcast %29 : vector<4x8x1xf32> to vector<4x8x8xf32>
    %31 = arith.mulf %26, %30 : vector<4x8x8xf32>
    %32 = arith.truncf %31 : vector<4x8x8xf32> to vector<4x8x8xbf16>
    "tpu.trace_start"() <{level = 10 : i32, message = "hqk,hkd->hqd"}> : () -> ()
    %cst_12 = arith.constant dense<0.000000e+00> : vector<4x8x16xf32>
    %33 = tpu.matmul %32, %20, %cst_12 {dimension_numbers = #tpu.dot_dimension_numbers<[2], [1], [1], [2], [0, 0, 0, 1, 1, 2], [0], [0]>} : vector<4x8x8xbf16>, vector<4x8x16xbf16>, vector<4x8x16xf32> -> vector<4x8x16xf32>
    "tpu.trace_stop"() : () -> ()
    %34 = tpu.transpose %33, [1, 0, 2] : vector<4x8x16xf32> -> vector<8x4x16xf32>
    %35 = vector.shape_cast %34 : vector<8x4x16xf32> to vector<8x64xf32>
    %cst_13 = arith.constant dense<0.000000e+00> : vector<8xf32>
    %36 = vector.multi_reduction <add>, %35, %cst_13 [1] : vector<8x64xf32> to vector<8xf32>
    %37 = vector.shape_cast %36 : vector<8xf32> to vector<8x1xf32>
    %cst_14 = arith.constant 6.400000e+01 : f32
    %38 = vector.broadcast %cst_14 : f32 to vector<8x1xf32>
    %39 = arith.divf %37, %38 : vector<8x1xf32>
    %40 = vector.broadcast %39 : vector<8x1xf32> to vector<8x64xf32>
    %41 = arith.subf %35, %40 : vector<8x64xf32>
    %42 = arith.mulf %41, %41 : vector<8x64xf32>
    %cst_15 = arith.constant dense<0.000000e+00> : vector<8xf32>
    %43 = vector.multi_reduction <add>, %42, %cst_15 [1] : vector<8x64xf32> to vector<8xf32>
    %44 = vector.shape_cast %43 : vector<8xf32> to vector<8x1xf32>
    %cst_16 = arith.constant 6.400000e+01 : f32
    %45 = vector.broadcast %cst_16 : f32 to vector<8x1xf32>
    %46 = arith.divf %44, %45 : vector<8x1xf32>
    %47 = vector.broadcast %39 : vector<8x1xf32> to vector<8x64xf32>
    %48 = arith.subf %35, %47 : vector<8x64xf32>
    %cst_17 = arith.constant 9.99999974E-6 : f32
    %49 = vector.broadcast %cst_17 : f32 to vector<8x1xf32>
    %50 = arith.addf %46, %49 : vector<8x1xf32>
    %51 = math.rsqrt %50 : vector<8x1xf32>
    %52 = vector.broadcast %51 : vector<8x1xf32> to vector<8x64xf32>
    %53 = arith.mulf %48, %52 : vector<8x64xf32>
    %c0_18 = arith.constant 0 : index
    %c0_19 = arith.constant 0 : index
    %54 = vector.load %arg5[%c0_18, %c0_19] : memref<1x64xf32, #tpu.memory_space<vmem>>, vector<1x64xf32>
    %55 = vector.broadcast %54 : vector<1x64xf32> to vector<8x64xf32>
    %56 = arith.mulf %53, %55 : vector<8x64xf32>
    %c0_20 = arith.constant 0 : index
    %c0_21 = arith.constant 0 : index
    %57 = vector.load %arg6[%c0_20, %c0_21] : memref<1x64xf32, #tpu.memory_space<vmem>>, vector<1x64xf32>
    %58 = vector.broadcast %57 : vector<1x64xf32> to vector<8x64xf32>
    %59 = arith.addf %56, %58 : vector<8x64xf32>
    %60 = arith.extf %1 : vector<8x64xbf16> to vector<8x64xf32>
    %61 = arith.addf %60, %59 : vector<8x64xf32>
    %62 = arith.truncf %61 : vector<8x64xf32> to vector<8x64xbf16>
    %c0_22 = arith.constant 0 : index
    %c0_23 = arith.constant 0 : index
    %c0_24 = arith.constant 0 : index
    %63 = vector.load %arg7[%c0_22, %c0_23, %c0_24] : memref<1x8x64xbf16, #tpu.memory_space<vmem>>, vector<1x8x64xbf16>
    %64 = vector.shape_cast %63 : vector<1x8x64xbf16> to vector<8x64xbf16>
    %65 = vector.shape_cast %62 : vector<8x64xbf16> to vector<1x8x64xbf16>
    tpu.vector_store %arg7[%c0_22, %c0_23, %c0_24], %65 {strides = array<i32>} : memref<1x8x64xbf16, #tpu.memory_space<vmem>>, vector<1x8x64xbf16>,
    return
  }
  func.func @transform_0(%arg0: i32, %arg1: i32) -> (i32, i32, i32) {
    %c0_i32 = arith.constant 0 : i32
    %c0_i32_0 = arith.constant 0 : i32
    return %arg0, %arg1, %c0_i32 : i32, i32, i32
  }
  func.func @transform_1(%arg0: i32, %arg1: i32) -> (i32, i32, i32) {
    %c0_i32 = arith.constant 0 : i32
    %c0_i32_0 = arith.constant 0 : i32
    %c0_i32_1 = arith.constant 0 : i32
    return %arg0, %c0_i32, %c0_i32_0 : i32, i32, i32
  }
  func.func @transform_2(%arg0: i32, %arg1: i32) -> (i32, i32) {
    %c0_i32 = arith.constant 0 : i32
    %c0_i32_0 = arith.constant 0 : i32
    %c0_i32_1 = arith.constant 0 : i32
    return %c0_i32, %c0_i32_0 : i32, i32
  }
  func.func @transform_3(%arg0: i32, %arg1: i32) -> (i32, i32) {
    %c0_i32 = arith.constant 0 : i32
    %c0_i32_0 = arith.constant 0 : i32
    %c0_i32_1 = arith.constant 0 : i32
    return %c0_i32, %c0_i32_0 : i32, i32
  }
  func.func @transform_4(%arg0: i32, %arg1: i32) -> (i32, i32) {
    %c0_i32 = arith.constant 0 : i32
    %c0_i32_0 = arith.constant 0 : i32
    %c0_i32_1 = arith.constant 0 : i32
    return %c0_i32, %c0_i32_0 : i32, i32
  }
  func.func @transform_5(%arg0: i32, %arg1: i32) -> (i32, i32, i32) {
    %c0_i32 = arith.constant 0 : i32
    %c0_i32_0 = arith.constant 0 : i32
    return %arg0, %arg1, %c0_i32 : i32, i32, i32
  }
}

</mosaic_0001>

<bundles_post_ra>
// kernel: tpu_custom_call.1
= control target key start
LH: loop header
LB: loop body
LE: loop exit
PB: predicated region body
PF: predicated region fallthrough
CT: control target
= control target key end

     0   :  { %s2588_s0 = inlined_call_operand.hbm [shape: bf16[2,8,64], index: 0, kind: input, shape index: {}]   ;;  %s2589_s1 = inlined_call_operand.hbm [shape: bf16[2,8,64], index: 1, kind: input, shape index: {}]   ;;  %s2590_s2 = inlined_call_operand.hbm [shape: bf16[64,192], index: 2, kind: input, shape index: {}]   ;;  %s2591_s3 = inlined_call_operand.vmem [shape: f32[1,64], index: 3, kind: input, shape index: {}]   ;;  %s2592_s4 = inlined_call_operand.vmem [shape: f32[1,64], index: 4, kind: input, shape index: {}]   ;;  %s2593_s5 = inlined_call_operand.hbm [shape: bf16[2,8,64], index: 5, kind: output, shape index: {}]  }
   0x1   :  { %2596 = sst [smem:[#allocation15_spill]] %s2590_s2 }
   0x2   :  { %10 = vsyncpa [#allocation3], 0 }
   0x3   :  { %12 = vsyncpa [#allocation3 + $0x1], 0 }
   0x4   :  { %13 = vsyncpa [#allocation6], 0 }
   0x5   :  { %15 = vsyncpa [#allocation6 + $0x1], 0 }
   0x6   :  { %16 = vsyncpa [#allocation4], 0 }
   0x7   :  { %18 = vsyncpa [#allocation4 + $0x1], 0  ;;  %s2190_s18 = smov 0   ;;  %s2192_s19 = smov 0  }
   0x8   :  { %s2194_s20 = smov 0   ;;  %s2196_s21 = smov 0  }
   0x9   :  { %s2198_s22 = smov 0   ;;  %s2200_s23 = smov 0  }
   0xa LB: > { %2597 = sst [smem:[#allocation13_spill]] %s2136_s22  ;;  %s2221_s24 = sadd.s32 4294967295, %s2140_s23   ;;  %s2140_s23 = sphi %s2200_s23, %s24_s23   ;;  %s2136_s22 = sphi %s2198_s22, %s2611_s22   ;;  %s2132_s21 = sphi %s2196_s21, %s2610_s21   ;;  %s2128_s20 = sphi %s2194_s20, %s2614_s20   ;;  %s2124_s19 = sphi %s2192_s19, %s2613_s19   ;;  %s2120_s18 = sphi %s2190_s18, %s2612_s18  }
   0xb   : > { %s1711_s25 = sadd.s32 4294967294, %s2140_s23   ;;  %p58_p0 = scmp.ne.s32.totalorder %s2124_s19, %s2120_s18 }
   0xc   : > { %p59_p1 = scmp.eq.s32.totalorder %s2221_s24, 0  ;;  %p179_p3 = scmp.eq.s32.totalorder %s1711_s25, 1 }
   0xd   : > { %p1712_p5 = scmp.ge.s32.totalorder %s2140_s23, 1  ;;  %p186_p7 = scmp.lt.s32.totalorder %s2140_s23, 3 }
   0xe   : > { %p2230_p4 = por %p59_p1, %p58_p0  ;;  %p2235_p6 = por %p179_p3, %p58_p0 }
   0xf   : > { %p2240_p8 = pnand %p1712_p5, %p186_p7  ;;  %s2142_s29 = smov [#allocation7]  }
  0x10   : > { %s2599_s27 = scalar_select %p2235_p6, 1, 0 }
  0x11   : > { %s198_s30 = sshll.u32 %s2142_s29, 4  ;;  %p1858_p9 = pneg %p2240_p8  ;;  %s199_s30 = int_to_ptr.vmem [resolvable:$true] %s198_s30 }
  0x12   : > { %s36_s7 = sadd.s32 1, %s2136_s22  ;;  %s1981_s8 = scalar_lea.vmem %s199_s30, 1024 }
  0x13   : > { %p2249_p11 = pnand %p1858_p9, %p59_p1  ;;  %p1982_p13 = scmp.ne.s32.totalorder %s199_s30, %s1981_s8 }
  0x14   : > { %p1989_p5 = scmp.lt.s32.totalorder %s199_s30, %s199_s30  ;;  %p1990_p7 = scmp.lt.s32.totalorder %s1981_s8, %s1981_s8 }
  0x15   : > { %p1972_p12 = pneg %p2249_p11 }
  0x16   : > { %p1991_p2 = por %p1990_p7, %p1989_p5 }
  0x17   : > { %p1984_p0 = pnand %p1982_p13, %p1972_p12 }
  0x19   : > { %p1985_p3 = pneg %p1984_p0 }
  0x1b   : > { %p1992_p6 = pnand %p1991_p2, %p1985_p3 }
  0x1d   : > { %1995 = shalt.err (!%p1992_p6)
}
  0x1e   : > { %s2143_s9 = smov 128   ;;  %s2144_s10 = smov 8  }
  0x1f   : > { %s2602_s2 = sld [smem:[#allocation15_spill]]  ;;  %p38_p2 = scmp.ge.s32.totalorder %s36_s7, 2 }
  0x20   : > { %s45_s13 = sadd.s32 1, %s2128_s20  ;;  %p52_p6 = scmp.ne.s32.totalorder %s2128_s20, %s2124_s19 }
  0x21   : > { %p53_p9 = scmp.eq.s32.totalorder %s2140_s23, 0  ;;  %s2616_s7 = smov (%p38_p2, %s36_s7), 0 }
  0x22   : > { %2603 = sst [smem:[#allocation14_spill]] %s2616_s7  ;;  %p2605_p13 = scmp.eq.s32.totalorder %s2221_s24, 1 }
  0x23   : > { %p2267_p12 = por %p53_p9, %p52_p6  ;;  %s40_s16 = ssub.s32 %s2136_s22, %s2616_s7 }
  0x24   : > { %p2273_p0 = por %p2605_p13, %p52_p6  ;;  %p43_p3 = scmp.eq.s32.totalorder %s40_s16, 0 }
  0x25   : > { %1861 = dma.hbm_to_vmem [thread:$0]  (!%p2249_p11), %s2602_s2, 1024, %s199_s30, [#allocation6], %s2143_s9, %s2143_s9, %s2144_s10  }
  0x26   : > { %p1874_p11 = scmp.lt.s32.totalorder %s2140_s23, 2  ;;  %s218_s17 = sand.u32 1, %s2128_s20  }
  0x27   : > { %s1715_s25 = sshll.u32 %s218_s17, 2  ;;  %s1716_s30 = sshll.u32 %s2136_s22, 6 }
  0x28   : > { %s2282_s29 = scalar_select %p43_p3, %s2128_s20, %s45_s13  }
  0x29   : > { %s228_s9 = scalar_lea.hbm %s2588_s0, %s1716_s30  ;;  %s222_s10 = scalar_lea.vmem [#allocation2], %s1715_s25 }
  0x2a   : > { %s230_s11 = sshll.u32 %s222_s10, 4  ;;  %p2290_p5 = pnand %p1874_p11, %p2267_p12  ;;  %s231_s11 = int_to_ptr.vmem [resolvable:$true] %s230_s11 }
  0x2b   : > { %s2297_s13 = scalar_lea.hbm %s2589_s1, %s1716_s30  ;;  %s237_s16 = sand.u32 1, %s2140_s23  }
  0x2c   : > { %s219_s22 = scalar_lea.sflag [#allocation3], %s218_s17  ;;  %p1998_p7 = pneg %p2290_p5 }
  0x2d   : > { %s2009_s6 = scalar_lea.vmem %s231_s11, 64  ;;  %s2145_s14 = smov [#allocation2]  }
  0x2e   : > { %p2010_p2 = scmp.ne.s32.totalorder %s231_s11, %s2009_s6  ;;  %s2014_s8 = sshll.u32 %s2145_s14, 4  ;;  %s2015_s8 = int_to_ptr.vmem [resolvable:$false] %s2014_s8 }
  0x2f   : > { %s2016_s10 = scalar_lea.vmem %s2015_s8, 128  ;;  %p2017_p12 = scmp.lt.s32.totalorder %s231_s11, %s2015_s8 }
  0x30   : > { %p2012_p6 = pnand %p2010_p2, %p1998_p7  ;;  %p2018_p13 = scmp.lt.s32.totalorder %s2016_s10, %s2009_s6 }
  0x32   : > { %p2013_p9 = pneg %p2012_p6  ;;  %p2019_p11 = por %p2018_p13, %p2017_p12 }
  0x34   : > { %p2020_p3 = pnand %p2019_p11, %p2013_p9 }
  0x36   : > { %2023 = shalt.err (!%p2020_p3)
}
  0x37   : > { %1865 = dma.hbm_to_vmem [thread:$0]  (!%p2290_p5), %s228_s9, 64, %s231_s11, %s219_s22  }
  0x38   : > { %s241_s2 = scalar_lea.vmem [#allocation5], %s1715_s25  ;;  %s238_s17 = scalar_lea.sflag [#allocation6], %s237_s16 }
  0x39   : > { %s248_s7 = sshll.u32 %s241_s2, 4  ;;  %s2146_s14 = smov [#allocation5]   ;;  %s249_s7 = int_to_ptr.vmem [resolvable:$true] %s248_s7 }
  0x3a   : > { %s2037_s30 = scalar_lea.vmem %s249_s7, 64  ;;  %s2042_s8 = sshll.u32 %s2146_s14, 4  ;;  %s2043_s8 = int_to_ptr.vmem [resolvable:$false] %s2042_s8 }
  0x3b   : > { %p2038_p2 = scmp.ne.s32.totalorder %s249_s7, %s2037_s30  ;;  %s2044_s6 = scalar_lea.vmem %s2043_s8, 128 }
  0x3c   : > { %p2045_p9 = scmp.lt.s32.totalorder %s249_s7, %s2043_s8  ;;  %p2046_p12 = scmp.lt.s32.totalorder %s2044_s6, %s2037_s30 }
  0x3d   : > { %p2040_p6 = pnand %p2038_p2, %p1998_p7 }
  0x3e   : > { %p2047_p13 = por %p2046_p12, %p2045_p9 }
  0x3f   : > { %p2041_p10 = pneg %p2040_p6 }
  0x41   : > { %p2048_p11 = pnand %p2047_p13, %p2041_p10 }
  0x43   : > { %2051 = shalt.err (!%p2048_p11)
}
  0x44   : > { %1868 = dma.hbm_to_vmem [thread:$0]  (!%p2290_p5), %s2297_s13, 64, %s249_s7, %s238_s17  }
  0x45   : > { %257 = sbr.rel (%p2240_p8) target bundleno = 1784 (0x6f8), region = 40  ;;  %s2316_s22 = sand.u32 (!%p2240_p8), 1, %s2124_s19  }
  0x46   : > { %s2319_s25 = sshll.u32 (!%p2240_p8), %s2316_s22, 2  ;;  %s260_s9 = scalar_lea.sflag (!%p2240_p8), [#allocation3], %s2316_s22 }
  0x47   : > { %s263_s11 = scalar_lea.vmem (!%p2240_p8), [#allocation2], %s2319_s25 }
  0x4a   : > { %2103 = dma.done.wait (%p2230_p4), %s260_s9, 64  }
  0x4b   : > { %2105 = vsyncadd (%p2230_p4), %s260_s9, 4294967232  ;;  %s268_s28 = sand.u32 1, %s2221_s24   ;;  %s272_s13 = scalar_lea.vmem [#allocation5], %s2319_s25 }
  0x4c   : > { %s269_s12 = scalar_lea.sflag [#allocation6], %s268_s28 }
  0x4d   : > { %2107 = dma.done.wait (%p2230_p4), %s269_s12, 64  }
  0x4e   : > { %2109 = vsyncadd (%p2230_p4), %s269_s12, 4294967232 }
  0x4f   : > { %2111 = dma.done.wait (%p59_p1), [#allocation6], 1024  }
  0x50   : > { %2113 = vsyncadd (%p59_p1), [#allocation6], 4294966272  ;;  %v2147_v0 = vmov 0.0   ;;  %v1940_v1 = vld [vmem:[#allocation7 + $0x30] ss:$8 sps:$4 sm:$0xff]   ;;  %s2148_s16 = smov 64   ;;  %v480_v36 = vlaneseq }
  0x51   : > { %1788 = vmatprep.subr.bf16.mxu1 %v2147_v0  ;;  %1776 = vmatprep.subr.bf16.mxu0 %v2147_v0  ;;  %v1942_v2 = vld [vmem:[#allocation7 + $0x34] ss:$8 sps:$4 sm:$0xff]   ;;  %v1943_v3 = vld [vmem:[#allocation7 + $0x20] ss:$8 sps:$4 sm:$0xff]   ;;  %v1945_v4 = vld [vmem:[#allocation7 + $0x24] ss:$8 sps:$4 sm:$0xff]  }
  0x52   : > { %413 = vrot.lane.b32.xlu0 %v1940_v1, %s2148_s16  ;;  %1777 = vmatpush3.bf16.msra.mxu0 %v1940_v1  ;;  %v1948_v5 = vld [vmem:[#allocation7 + $0x10] ss:$8 sps:$4 sm:$0xff]   ;;  %vm2149_vm0 = vmmov 0   ;;  %v1946_v6 = vld [vmem:[#allocation7 + $0x14] ss:$8 sps:$4 sm:$0xff]   ;;  %vm343_vm1 = vcmask 523264  }
  0x53   : > { %1778 = vmatprep.subr.bf16.mxu0 %v2147_v0  ;;  %409 = vrot.lane.b32.xlu1 %v1943_v3, %s2148_s16  ;;  %v1951_v7 = vld [vmem:[#allocation7] ss:$8 sps:$4 sm:$0xff]   ;;  %v1949_v8 = vld [vmem:[#allocation7 + $0x4] ss:$8 sps:$4 sm:$0xff]   ;;  %v2355_v9 = vld [vmem:[%s263_s11] sm:$0xf] }
  0x54   : > { %1796 = vmatprep.mubr.msk.bf16.mxu1 %vm2149_vm0, %v2147_v0  ;;  %1784 = vmatprep.mubr.msk.bf16.mxu0 %vm2149_vm0, %v2147_v0  ;;  %v310_v22 = vld [vmem:[%s272_s13] sm:$0xf]  ;;  %s2150_s24 = smov 96   ;;  %s2151_s26 = smov 112   ;;  %v2153_v34 = vmov 1983009808  }
  0x55   : > { %s2152_s10 = smov 80   ;;  %v478_v35 = vunpack.c.l.s4 %v2153_v34  ;;  %v481_v38 = vshrl.u32 %v480_v36, 7  ;;  %v2154_v39 = vmov 1934713408   ;;  %v2155_v56 = vmov 0   ;;  %s2156_s2 = smov 32  }
  0x56   : > { %415 = vrot.lane.b32.xlu0 %v1942_v2, %s2148_s16  ;;  %1779 = vmatpush3.bf16.msra.mxu0 %v1943_v3  ;;  %v495_v40 = vunpack.c.l.s4 %v2154_v39  ;;  %vm976_vm2 = vcmask 130048   ;;  %vm1161_vm3 = vcmask 64512   ;;  %vm1213_vm4 = vcmask 1043456   ;;  %s2157_s7 = smov 16   ;;  %s2158_s17 = smov 48  }
  0x57   : > { %1780 = vmatprep.subr.bf16.mxu0 %v2147_v0  ;;  %411 = vrot.lane.b32.xlu1 %v1945_v4, %s2148_s16  ;;  %v479_v37 = vunpack.c.0.s8 %v478_v35  ;;  %vm1544_vm5 = vcmask 261120   ;;  %vm1546_vm6 = vcmask 392192   ;;  %s1747_s9 = sshll.u32 %s2132_s21, 6  ;;  %s307_s11 = scalar_lea.vmem [#allocation8], %s2319_s25  ;;  %vm1581_vm7 = vcmask 519168  }
  0x58   : > { %v496_v42 = vunpack.c.0.s8 %v495_v40  ;;  %s1598_s28 = sshll.u32 %s307_s11, 4  ;;  %s1599_s28 = int_to_ptr.vmem [resolvable:$true] %s1598_s28 }
  0x59   : > { %v2381_v41 = vsub.s32 %v479_v37, %v481_v38 }
  0x5a   : > { %405 = vrot.lane.b32.xlu0 %v1948_v5, %s2148_s16  ;;  %1781 = vmatpush3.bf16.msra.mxu0 %v1948_v5  ;;  %v2387_v45 = vsub.s32 %v496_v42, %v481_v38 }
  0x5b   : > { %1782 = vmatprep.subr.bf16.mxu0 %v2147_v0  ;;  %407 = vrot.lane.b32.xlu1 %v1946_v6, %s2148_s16 }
  0x5e   : > { %401 = vrot.lane.b32.xlu0 %v1951_v7, %s2148_s16  ;;  %1783 = vmatpush3.bf16.msra.mxu0 %v1951_v7 }
  0x5f   : > { %1800 = vmatprep.subr.bf16.mxu0 %v2147_v0  ;;  %403 = vrot.lane.b32.xlu1 %v1949_v8, %s2148_s16 }
  0x61   : > { %1785 = vmatmul.mubr.msk.bf16.vlgmr.msra.gmra.mxu0 %vm343_vm1, %v2355_v9 }
  0x62   : > { %1802 = vmatprep.mubr.msk.bf16.mxu0 %vm2149_vm0, %v2147_v0 }
  0xc4   : > { %v414_v10 = vpop.permute.xlu0 %413 }
  0xc5   : > { %v410_v11 = vpop.permute.xlu1 %409 }
  0xc8   : > { %v416_v12 = vpop.permute.xlu0 %415 }
  0xc9   : > { %v421_v13 = vsel %vm343_vm1, %v414_v10, %v416_v12  ;;  %v412_v14 = vpop.permute.xlu1 %411 }
  0xca   : > { %1789 = vmatpush3.bf16.msra.mxu1 %v421_v13  ;;  %v420_v16 = vsel %vm343_vm1, %v410_v11, %v412_v14 }
  0xcb   : > { %1790 = vmatprep.subr.bf16.mxu1 %v2147_v0 }
  0xcc   : > { %v406_v15 = vpop.permute.xlu0 %405 }
  0xcd   : > { %v408_v17 = vpop.permute.xlu1 %407 }
  0xce   : > { %1791 = vmatpush3.bf16.msra.mxu1 %v420_v16  ;;  %v419_v18 = vsel %vm343_vm1, %v406_v15, %v408_v17 }
  0xcf   : > { %1792 = vmatprep.subr.bf16.mxu1 %v2147_v0 }
  0xd0   : > { %v402_v19 = vpop.permute.xlu0 %401 }
  0xd1   : > { %v404_v20 = vpop.permute.xlu1 %403 }
  0xd2   : > { %1793 = vmatpush3.bf16.msra.mxu1 %v419_v18  ;;  %v418_v21 = vsel %vm343_vm1, %v402_v19, %v404_v20 }
  0xd3   : > { %1794 = vmatprep.subr.bf16.mxu1 %v2147_v0 }
  0xd6   : > { %1795 = vmatpush3.bf16.msra.mxu1 %v418_v21 }
  0xd7   : > { %1806 = vmatprep.subr.bf16.mxu1 %v2147_v0 }
  0xd9   : > { %1797 = vmatmul.mubr.msk.bf16.vlgmr.msra.gmra.mxu1 %vm343_vm1, %v310_v22 }
  0xda   : > { %1808 = vmatprep.mubr.msk.bf16.mxu1 %vm2149_vm0, %v2147_v0 }
 0x121   : > { %v381_v23 = vpop.f32.mrf.mxu0 }
 0x122   : > { %v387_v27 = vmul.f32 0.125, %v381_v23 }
 0x123   : > { %v1786_v24 = vpop.f32.mrf.mxu0 }
 0x124   : > { %v388_v31 = vpack.c.bf16 %v387_v27, %v387_v27 }
 0x125   : > { %v384_v25 = vpop.f32.mrf.mxu0 }
 0x126   : > { %v483_v63 = vrot.slane %v388_v31, %v2381_v41 }
 0x127   : > { %v1787_v26 = vpop.f32.mrf.mxu0 }
 0x199   : > { %v463_v28 = vpop.f32.mrf.mxu1 }
 0x19a   : > { %v2376_v29 = vpack.c.bf16 %v463_v28, %v463_v28 }
 0x19b   : > { %v1798_v30 = vpop.f32.mrf.mxu1 }
 0x19c   : > { %641 = vrot.lane.b32.xlu1 %v2376_v29, %s2150_s24  ;;  %639 = vrot.lane.b32.xlu0 %v2376_v29, %s2151_s26  ;;  %v651_v46 = vrot.slane %v2376_v29, %v2381_v41 }
 0x19d   : > { %v466_v32 = vpop.f32.mrf.mxu1 }
 0x19f   : > { %v1799_v33 = vpop.f32.mrf.mxu1 }
 0x1a0   : > { %643 = vrot.lane.b32.xlu0 %v2376_v29, %s2152_s10  ;;  %471 = vrot.lane.b32.xlu1 %v388_v31, %s2151_s26  ;;  %s2052_s26 = scalar_lea.vmem %s1599_s28, 64 }
 0x1a1   : > { %p2053_p1 = scmp.ne.s32.totalorder %s1599_s28, %s2052_s26 }
 0x1a3   : > { %p2054_p4 = pnand %p2053_p1, %p2273_p0 }
 0x1a4   : > { %473 = vrot.lane.b32.xlu0 %v388_v31, %s2150_s24  ;;  %475 = vrot.lane.b32.xlu1 %v388_v31, %s2152_s10  ;;  %s1584_s24 = scalar_lea.sflag [#allocation4], %s2316_s22  ;;  %s2159_s10 = smov [#allocation8]  }
 0x1a5   : > { %p2055_p8 = pneg %p2054_p4 }
 0x20e   : > { %v2383_v43 = vpop.permute.xlu1 %641  ;;  %v2385_v44 = vpop.permute.xlu0 %639 }
 0x20f   : > { %v659_v47 = vrot.slane %v2383_v43, %v2381_v41  ;;  %v685_v55 = vrot.slane %v2385_v44, %v2381_v41 }
 0x211   : > { %v660_v48 = vcombine.low %v651_v46, %v659_v47  ;;  %v661_v49 = vcombine.high %v651_v46, %v659_v47 }
 0x212   : > { %v2393_v50 = vpop.permute.xlu0 %643  ;;  %v472_v51 = vpop.permute.xlu1 %471 }
 0x213   : > { %v668_v52 = vrot.slane %v660_v48, %v2387_v45  ;;  %v675_v53 = vrot.slane %v661_v49, %v2387_v45  ;;  %v693_v54 = vrot.slane %v2393_v50, %v2381_v41  ;;  %v517_v59 = vrot.slane %v472_v51, %v2381_v41 }
 0x215   : > { %v676_v57 = vcombine.high %v668_v52, %v2155_v56  ;;  %v677_v58 = vcombine.high %v675_v53, %v2155_v56  ;;  %v694_v60 = vcombine.low %v685_v55, %v693_v54  ;;  %v695_v61 = vcombine.high %v685_v55, %v693_v54 }
 0x216   : > { %v474_v62 = vpop.permute.xlu0 %473  ;;  %v476_v1 = vpop.permute.xlu1 %475  ;;  %v716_v2 = vshrl.u32 %v668_v52, 16  ;;  %v732_v3 = vshrl.u32 %v675_v53, 16 }
 0x217   : > { %v491_v4 = vrot.slane %v474_v62, %v2381_v41  ;;  %v525_v5 = vrot.slane %v476_v1, %v2381_v41  ;;  %v724_v6 = vshrl.u32 %v676_v57, 16  ;;  %v740_v7 = vshrl.u32 %v677_v58, 16 }
 0x218   : > { %v702_v8 = vrot.slane %v694_v60, %v2387_v45  ;;  %v709_v10 = vrot.slane %v695_v61, %v2387_v45 }
 0x219   : > { %v492_v11 = vcombine.low %v483_v63, %v491_v4  ;;  %v493_v12 = vcombine.high %v483_v63, %v491_v4  ;;  %v526_v13 = vcombine.low %v517_v59, %v525_v5  ;;  %v527_v14 = vcombine.high %v517_v59, %v525_v5 }
 0x21a   : > { %v710_v15 = vcombine.high %v702_v8, %v2155_v56  ;;  %v711_v16 = vcombine.high %v709_v10, %v2155_v56  ;;  %v714_v17 = vpack.i.b16 %v702_v8, %v668_v52  ;;  %v717_v18 = vshrl.u32 %v702_v8, 16 }
 0x21b   : > { %v730_v19 = vpack.i.b16 %v709_v10, %v675_v53  ;;  %v733_v20 = vshrl.u32 %v709_v10, 16  ;;  %v500_v21 = vrot.slane %v492_v11, %v2387_v45  ;;  %v507_v22 = vrot.slane %v493_v12, %v2387_v45 }
 0x21c   : > { %v718_v23 = vpack.i.b16 %v717_v18, %v716_v2  ;;  %v722_v24 = vpack.i.b16 %v710_v15, %v676_v57  ;;  %v725_v25 = vshrl.u32 %v710_v15, 16  ;;  %v738_v26 = vpack.i.b16 %v711_v16, %v677_v58 }
 0x21d   : > { %v734_v27 = vpack.i.b16 %v733_v20, %v732_v3  ;;  %v741_v28 = vshrl.u32 %v711_v16, 16  ;;  %v744_v30 = vcombine.low %v714_v17, %v730_v19  ;;  %v508_v31 = vcombine.high %v500_v21, %v2155_v56 }
 0x21e   : > { %v726_v32 = vpack.i.b16 %v725_v25, %v724_v6  ;;  %v752_v33 = vcombine.low %v722_v24, %v738_v26  ;;  %v509_v34 = vcombine.high %v507_v22, %v2155_v56  ;;  %v548_v37 = vshrl.u32 %v500_v21, 16 }
 0x21f   : > { %v742_v35 = vpack.i.b16 %v741_v28, %v740_v7  ;;  %v769_v36 = vcombine.low %v718_v23, %v734_v27  ;;  %v556_v38 = vshrl.u32 %v508_v31, 16  ;;  %v564_v39 = vshrl.u32 %v507_v22, 16 }
 0x220   : > { %v572_v40 = vshrl.u32 %v509_v34, 16  ;;  %v534_v42 = vrot.slane %v526_v13, %v2387_v45  ;;  %v541_v46 = vrot.slane %v527_v14, %v2387_v45  ;;  %v751_v47 = vrot.slane %v744_v30, %v2381_v41 }
 0x221   : > { %v759_v48 = vrot.slane %v752_v33, %v2381_v41  ;;  %v776_v49 = vrot.slane %v769_v36, %v2381_v41  ;;  %v777_v51 = vcombine.low %v726_v32, %v742_v35 }
 0x222   : > { %v542_v52 = vcombine.high %v534_v42, %v2155_v56  ;;  %v543_v53 = vcombine.high %v541_v46, %v2155_v56  ;;  %v546_v54 = vpack.i.b16 %v534_v42, %v500_v21  ;;  %v549_v55 = vshrl.u32 %v534_v42, 16 }
 0x223   : > { %v562_v57 = vpack.i.b16 %v541_v46, %v507_v22  ;;  %v565_v58 = vshrl.u32 %v541_v46, 16  ;;  %v760_v59 = vcombine.low %v751_v47, %v759_v48  ;;  %v784_v60 = vrot.slane %v777_v51, %v2381_v41 }
 0x224   : > { %v550_v61 = vpack.i.b16 %v549_v55, %v548_v37  ;;  %v554_v62 = vpack.i.b16 %v542_v52, %v508_v31  ;;  %v557_v63 = vshrl.u32 %v542_v52, 16  ;;  %v570_v1 = vpack.i.b16 %v543_v53, %v509_v34 }
 0x225   : > { %v566_v2 = vpack.i.b16 %v565_v58, %v564_v39  ;;  %v573_v3 = vshrl.u32 %v543_v53, 16  ;;  %v576_v4 = vcombine.low %v546_v54, %v562_v57  ;;  %v767_v5 = vrot.slane %v760_v59, %v2387_v45 }
 0x226   : > { %v558_v6 = vpack.i.b16 %v557_v63, %v556_v38  ;;  %v584_v7 = vcombine.low %v554_v62, %v570_v1  ;;  %v785_v8 = vcombine.low %v776_v49, %v784_v60 }
 0x227   : > { %v574_v10 = vpack.i.b16 %v573_v3, %v572_v40  ;;  %v601_v11 = vcombine.low %v550_v61, %v566_v2  ;;  %v583_v12 = vrot.slane %v576_v4, %v2381_v41  ;;  %v797_v16 = vshrl.u32 %v767_v5, 16 }
 0x228   : > { %v591_v13 = vrot.slane %v584_v7, %v2381_v41  ;;  %v792_v14 = vrot.slane %v785_v8, %v2387_v45  ;;  %v768_v25 = vcombine.high %v767_v5, %v2155_v56 }
 0x229   : > { %v609_v15 = vcombine.low %v558_v6, %v574_v10  ;;  %v608_v21 = vrot.slane %v601_v11, %v2381_v41 }
 0x22a   : > { %v592_v17 = vcombine.low %v583_v12, %v591_v13  ;;  %v796_v18 = vpack.i.b16 %v792_v14, %v767_v5  ;;  %v798_v19 = vshrl.u32 %v792_v14, 16  ;;  %v793_v20 = vcombine.high %v792_v14, %v2155_v56 }
 0x22b   : > { %v616_v22 = vrot.slane %v609_v15, %v2381_v41  ;;  %v803_v33 = vshrl.u32 %v768_v25, 16 }
 0x22c   : > { %v981_v23 = vsel %vm976_vm2, %v796_v18, 0  ;;  %v799_v24 = vpack.i.b16 %v798_v19, %v797_v16  ;;  %v599_v28 = vrot.slane %v592_v17, %v2387_v45  ;;  %v804_v30 = vshrl.u32 %v793_v20, 16 }
 0x22d   : > { %v617_v26 = vcombine.low %v608_v21, %v616_v22  ;;  %1801 = vmatpush3.bf16.xpose.msra.mxu0 %v981_v23  ;;  %v802_v32 = vpack.i.b16 %v793_v20, %v768_v25 }
 0x22e   : > { %v1027_v27 = vsel %vm976_vm2, %v799_v24, 0  ;;  %1812 = vmatprep.subr.bf16.mxu0 %v2147_v0  ;;  %v629_v36 = vshrl.u32 %v599_v28, 16  ;;  %v805_v37 = vpack.i.b16 %v804_v30, %v803_v33  ;;  %v600_v46 = vcombine.high %v599_v28, %v2155_v56 }
 0x22f   : > { %1807 = vmatpush3.bf16.xpose.msra.mxu1 %v1027_v27  ;;  %v624_v31 = vrot.slane %v617_v26, %v2387_v45  ;;  %v1073_v38 = vsel %vm976_vm2, %v802_v32, 0 }
 0x230   : > { %1818 = vmatprep.subr.bf16.mxu1 %v2147_v0  ;;  %v1119_v42 = vsel %vm976_vm2, %v805_v37, 0  ;;  %v635_v49 = vshrl.u32 %v600_v46, 16 }
 0x231   : > { %v630_v34 = vshrl.u32 %v624_v31, 16  ;;  %v628_v35 = vpack.i.b16 %v624_v31, %v599_v28  ;;  %v625_v40 = vcombine.high %v624_v31, %v2155_v56 }
 0x233   : > { %v631_v39 = vpack.i.b16 %v630_v34, %v629_v36  ;;  %v636_v47 = vshrl.u32 %v625_v40, 16  ;;  %v634_v48 = vpack.i.b16 %v625_v40, %v600_v46 }
 0x234   : > { %1803 = vmatmul.mubr.msk.bf16.vlgmr.msra.gmra.mxu0 %vm976_vm2, %v628_v35 }
 0x235   : > { %1813 = vmatpush3.bf16.xpose.msra.mxu0 %v1073_v38  ;;  %1814 = vmatprep.mubr.msk.bf16.mxu0 %vm2149_vm0, %v2147_v0  ;;  %v637_v51 = vpack.i.b16 %v636_v47, %v635_v49 }
 0x236   : > { %1809 = vmatmul.mubr.msk.bf16.vlgmr.msra.gmra.mxu1 %vm976_vm2, %v631_v39  ;;  %1824 = vmatprep.subr.bf16.mxu0 %v2147_v0 }
 0x237   : > { %1819 = vmatpush3.bf16.xpose.msra.mxu1 %v1119_v42  ;;  %1820 = vmatprep.mubr.msk.bf16.mxu1 %vm2149_vm0, %v2147_v0 }
 0x238   : > { %1830 = vmatprep.subr.bf16.mxu1 %v2147_v0 }
 0x23c   : > { %1815 = vmatmul.mubr.msk.bf16.vlgmr.msra.gmra.mxu0 %vm976_vm2, %v634_v48 }
 0x23d   : > { %1826 = vmatprep.mubr.msk.bf16.mxu0 %vm2149_vm0, %v2147_v0 }
 0x23e   : > { %1821 = vmatmul.mubr.msk.bf16.vlgmr.msra.gmra.mxu1 %vm976_vm2, %v637_v51 }
 0x23f   : > { %1832 = vmatprep.mubr.msk.bf16.mxu1 %vm2149_vm0, %v2147_v0 }
 0x2f4   : > { %v1017_v52 = vpop.f32.mrf.mxu0 }
 0x2f5   : > { %v1162_v53 = vsel %vm1161_vm3, %v1017_v52, -inf }
 0x2f6   : > { %v1063_v54 = vpop.f32.mrf.mxu1  ;;  %1163 = vmax.xlane.f32.xlu0 %v1162_v53  ;;  %v1804_v55 = vpop.f32.mrf.mxu0 }
 0x2f7   : > { %v1165_v57 = vsel %vm1161_vm3, %v1063_v54, -inf }
 0x2f8   : > { %1166 = vmax.xlane.f32.xlu1 %v1165_v57  ;;  %v1020_v58 = vpop.f32.mrf.mxu0  ;;  %v1810_v59 = vpop.f32.mrf.mxu1 }
 0x2fa   : > { %v1805_v60 = vpop.f32.mrf.mxu0  ;;  %v1066_v61 = vpop.f32.mrf.mxu1 }
 0x2fc   : > { %v1811_v62 = vpop.f32.mrf.mxu1  ;;  %v1109_v63 = vpop.f32.mrf.mxu0 }
 0x2fd   : > { %v1168_v1 = vsel %vm1161_vm3, %v1109_v63, -inf }
 0x2fe   : > { %v1155_v2 = vpop.f32.mrf.mxu1  ;;  %1169 = vmax.xlane.f32.xlu0 %v1168_v1  ;;  %v1816_v3 = vpop.f32.mrf.mxu0 }
 0x2ff   : > { %v1171_v6 = vsel %vm1161_vm3, %v1155_v2, -inf }
 0x300   : > { %v1112_v4 = vpop.f32.mrf.mxu0  ;;  %v1822_v5 = vpop.f32.mrf.mxu1 }
 0x302   : > { %v1158_v7 = vpop.f32.mrf.mxu1  ;;  %1172 = vmax.xlane.f32.xlu0 %v1171_v6  ;;  %v1817_v8 = vpop.f32.mrf.mxu0 }
 0x304   : > { %v1823_v10 = vpop.f32.mrf.mxu1 }
 0x309   : > { %806 = vrot.lane.b32.xlu1 %v2376_v29, %s2148_s16 }
 0x37f   : > { %v1164_v11 = vpop.xlane.xlu0 %1163 }
 0x380   : > { %v1174_v12 = vsub.f32 %v1017_v52, %v1164_v11 }
 0x381   : > { %v1167_v13 = vpop.xlane.xlu1 %1166 }
 0x382   : > { %v1178_v14 = vmul.f32 1.442695, %v1174_v12  ;;  %v1175_v15 = vsub.f32 %v1063_v54, %v1167_v13 }
 0x384   : > { %1952 = vpow2.f32 %v1178_v14  ;;  %v1180_v16 = vmul.f32 1.442695, %v1175_v15 }
 0x386   : > { %1954 = vpow2.f32 %v1180_v16 }
 0x387   : > { %v1170_v29 = vpop.xlane.xlu0 %1169 }
 0x388   : > { %v1176_v22 = vsub.f32 %v1109_v63, %v1170_v29 }
 0x38a   : > { %v1182_v24 = vmul.f32 1.442695, %v1176_v22 }
 0x38b   : > { %v1173_v21 = vpop.xlane.xlu0 %1172 }
 0x38c   : > { %v1177_v23 = vsub.f32 %v1155_v2, %v1173_v21  ;;  %1956 = vpow2.f32 %v1182_v24 }
 0x38e   : > { %v1184_v25 = vmul.f32 1.442695, %v1177_v23 }
 0x390   : > { %1958 = vpow2.f32 %v1184_v25 }
 0x391   : > { %v2461_v17 = vpop.eup %1952 }
 0x392   : > { %v1186_v18 = vsel %vm1161_vm3, %v2461_v17, 0.0 }
 0x393   : > { %v2465_v19 = vpop.eup %1954  ;;  %1187 = vadd.xlane.f32.xlu1 %v1186_v18 }
 0x394   : > { %v1189_v20 = vsel %vm1161_vm3, %v2465_v19, 0.0 }
 0x395   : > { %1190 = vadd.xlane.f32.xlu0 %v1189_v20 }
 0x399   : > { %v2475_v26 = vpop.eup %1956 }
 0x39d   : > { %v2477_v27 = vpop.eup %1958 }
 0x3a4   : > { %810 = vrot.lane.b32.xlu1 %v2383_v43, %s2148_s16  ;;  %v1192_v43 = vsel %vm1161_vm3, %v2475_v26, 0.0 }
 0x3a8   : > { %812 = vrot.lane.b32.xlu1 %v2393_v50, %s2148_s16  ;;  %v1195_v50 = vsel %vm1161_vm3, %v2477_v27, 0.0 }
 0x3ab   : > { %808 = vrot.lane.b32.xlu0 %v2385_v44, %s2148_s16  ;;  %v807_v44 = vpop.permute.xlu1 %806  ;;  %s1596_s16 = scalar_lea.hbm %s2593_s5, %s1747_s9 }
 0x3ac   : > { %v821_v32 = vrot.slane %v807_v44, %v2381_v41 }
 0x3ca   : > { %1193 = vadd.xlane.f32.xlu0 %v1192_v43 }
 0x3cc   : > { %1196 = vadd.xlane.f32.xlu1 %v1195_v50 }
 0x41c   : > { %v1188_v28 = vpop.xlane.xlu1 %1187 }
 0x41d   : > { %1960 = vrcp.f32 %v1188_v28 }
 0x41e   : > { %v1191_v30 = vpop.xlane.xlu0 %1190 }
 0x41f   : > { %1962 = vrcp.f32 %v1191_v30 }
 0x420   : > { %v811_v31 = vpop.permute.xlu1 %810 }
 0x421   : > { %v829_v33 = vrot.slane %v811_v31, %v2381_v41 }
 0x422   : > { %v809_v36 = vpop.permute.xlu0 %808 }
 0x423   : > { %v830_v34 = vcombine.low %v821_v32, %v829_v33  ;;  %v831_v35 = vcombine.high %v821_v32, %v829_v33  ;;  %v855_v40 = vrot.slane %v809_v36, %v2381_v41 }
 0x424   : > { %v813_v37 = vpop.permute.xlu1 %812 }
 0x425   : > { %v838_v38 = vrot.slane %v830_v34, %v2387_v45  ;;  %v863_v39 = vrot.slane %v813_v37, %v2381_v41  ;;  %v845_v42 = vrot.slane %v831_v35, %v2387_v45 }
 0x427   : > { %v864_v46 = vcombine.low %v855_v40, %v863_v39  ;;  %v865_v47 = vcombine.high %v855_v40, %v863_v39  ;;  %v846_v48 = vcombine.high %v838_v38, %v2155_v56  ;;  %v847_v52 = vcombine.high %v845_v42, %v2155_v56 }
 0x428   : > { %v886_v53 = vshrl.u32 %v838_v38, 16  ;;  %v902_v60 = vshrl.u32 %v845_v42, 16 }
 0x429   : > { %v872_v49 = vrot.slane %v864_v46, %v2387_v45  ;;  %v879_v51 = vrot.slane %v865_v47, %v2387_v45  ;;  %v894_v59 = vshrl.u32 %v846_v48, 16  ;;  %v910_v4 = vshrl.u32 %v847_v52, 16 }
 0x42a   : > { %v1961_v21 = vpop.eup %1960 }
 0x42b   : > { %v880_v54 = vcombine.high %v872_v49, %v2155_v56  ;;  %v881_v55 = vcombine.high %v879_v51, %v2155_v56  ;;  %v884_v57 = vpack.i.b16 %v872_v49, %v838_v38  ;;  %v887_v58 = vshrl.u32 %v872_v49, 16 }
 0x42c   : > { %v900_v61 = vpack.i.b16 %v879_v51, %v845_v42  ;;  %v903_v62 = vshrl.u32 %v879_v51, 16  ;;  %v1963_v23 = vpop.eup %1962  ;;  %v1202_v43 = vmul.f32 %v1961_v21, %v2461_v17 }
 0x42d   : > { %v888_v63 = vpack.i.b16 %v887_v58, %v886_v53  ;;  %v892_v1 = vpack.i.b16 %v880_v54, %v846_v48  ;;  %v895_v2 = vshrl.u32 %v880_v54, 16  ;;  %v908_v3 = vpack.i.b16 %v881_v55, %v847_v52 }
 0x42e   : > { %v904_v5 = vpack.i.b16 %v903_v62, %v902_v60  ;;  %v911_v6 = vshrl.u32 %v881_v55, 16  ;;  %v914_v7 = vcombine.low %v884_v57, %v900_v61  ;;  %v1203_v31 = vmul.f32 %v1963_v23, %v2465_v19 }
 0x42f   : > { %v896_v8 = vpack.i.b16 %v895_v2, %v894_v59  ;;  %v922_v10 = vcombine.low %v892_v1, %v908_v3  ;;  %v1206_v38 = vpack.c.bf16 %v1202_v43, %v1202_v43 }
 0x430   : > { %v912_v11 = vpack.i.b16 %v911_v6, %v910_v4  ;;  %v939_v12 = vcombine.low %v888_v63, %v904_v5  ;;  %v921_v13 = vrot.slane %v914_v7, %v2381_v41  ;;  %v1207_v39 = vpack.c.bf16 %v1203_v31, %v1203_v31 }
 0x431   : > { %v929_v14 = vrot.slane %v922_v10, %v2381_v41 }
 0x432   : > { %v947_v15 = vcombine.low %v896_v8, %v912_v11  ;;  %v946_v18 = vrot.slane %v939_v12, %v2381_v41 }
 0x433   : > { %v930_v16 = vcombine.low %v921_v13, %v929_v14 }
 0x434   : > { %v954_v20 = vrot.slane %v947_v15, %v2381_v41 }
 0x435   : > { %v937_v29 = vrot.slane %v930_v16, %v2387_v45 }
 0x436   : > { %v955_v22 = vcombine.low %v946_v18, %v954_v20 }
 0x437   : > { %v938_v24 = vcombine.high %v937_v29, %v2155_v56  ;;  %v967_v44 = vshrl.u32 %v937_v29, 16 }
 0x438   : > { %v962_v25 = vrot.slane %v955_v22, %v2387_v45 }
 0x439   : > { %v973_v32 = vshrl.u32 %v938_v24, 16 }
 0x43a   : > { %v966_v50 = vpack.i.b16 %v962_v25, %v937_v29  ;;  %v968_v28 = vshrl.u32 %v962_v25, 16  ;;  %v963_v30 = vcombine.high %v962_v25, %v2155_v56 }
 0x43c   : > { %v1215_v33 = vsel %vm1213_vm4, %v966_v50, 0  ;;  %v969_v34 = vpack.i.b16 %v968_v28, %v967_v44  ;;  %v972_v35 = vpack.i.b16 %v963_v30, %v938_v24  ;;  %v974_v36 = vshrl.u32 %v963_v30, 16 }
 0x43d   : > { %1825 = vmatpush3.bf16.msra.mxu0 %v1215_v33 }
 0x43e   : > { %v1261_v37 = vsel %vm1213_vm4, %v969_v34, 0  ;;  %1836 = vmatprep.subr.bf16.mxu0 %v2147_v0  ;;  %v975_v17 = vpack.i.b16 %v974_v36, %v973_v32  ;;  %v1307_v56 = vsel %vm1213_vm4, %v972_v35, 0 }
 0x43f   : > { %1831 = vmatpush3.bf16.msra.mxu1 %v1261_v37 }
 0x440   : > { %1827 = vmatmul.mubr.msk.bf16.vlgmr.msra.gmra.mxu0 %vm1161_vm3, %v1206_v38  ;;  %1842 = vmatprep.subr.bf16.mxu1 %v2147_v0  ;;  %v1353_v19 = vsel %vm1213_vm4, %v975_v17, 0 }
 0x441   : > { %1837 = vmatpush3.bf16.msra.mxu0 %v1307_v56  ;;  %1838 = vmatprep.mubr.msk.bf16.mxu0 %vm2149_vm0, %v2147_v0 }
 0x442   : > { %1833 = vmatmul.mubr.msk.bf16.vlgmr.msra.gmra.mxu1 %vm1161_vm3, %v1207_v39 }
 0x443   : > { %1843 = vmatpush3.bf16.msra.mxu1 %v1353_v19  ;;  %1844 = vmatprep.mubr.msk.bf16.mxu1 %vm2149_vm0, %v2147_v0 }
 0x453   : > { %v1194_v40 = vpop.xlane.xlu0 %1193 }
 0x454   : > { %1964 = vrcp.f32 %v1194_v40 }
 0x455   : > { %v1197_v42 = vpop.xlane.xlu1 %1196 }
 0x456   : > { %1966 = vrcp.f32 %v1197_v42 }
 0x461   : > { %v1965_v46 = vpop.eup %1964 }
 0x462   : > { %v1204_v47 = vmul.f32 %v1965_v46, %v2475_v26 }
 0x463   : > { %v1967_v48 = vpop.eup %1966 }
 0x464   : > { %v1208_v49 = vpack.c.bf16 %v1204_v47, %v1204_v47  ;;  %v1205_v51 = vmul.f32 %v1967_v48, %v2477_v27 }
 0x466   : > { %1839 = vmatmul.mubr.msk.bf16.vlgmr.msra.gmra.mxu0 %vm1161_vm3, %v1208_v49  ;;  %v1209_v52 = vpack.c.bf16 %v1205_v51, %v1205_v51 }
 0x468   : > { %1845 = vmatmul.mubr.msk.bf16.vlgmr.msra.gmra.mxu1 %vm1161_vm3, %v1209_v52 }
 0x500   : > { %v1251_v53 = vpop.f32.mrf.mxu0 }
 0x502   : > { %v1828_v54 = vpop.f32.mrf.mxu0  ;;  %v1297_v55 = vpop.f32.mrf.mxu1 }
 0x504   : > { %v1254_v0 = vpop.f32.mrf.mxu0  ;;  %v1834_v57 = vpop.f32.mrf.mxu1 }
 0x506   : > { %v1829_v58 = vpop.f32.mrf.mxu0  ;;  %v1300_v59 = vpop.f32.mrf.mxu1 }
 0x507   : > { %v1744_v58 = vld [vmem:[%s2591_s3] ss:$0 sm:$0xff] }
 0x508   : > { %v1835_v60 = vpop.f32.mrf.mxu1 }
 0x509   : > { %v1745_v60 = vld [vmem:[%s2592_s4] ss:$0 sm:$0xff] }
 0x526   : > { %v1343_v61 = vpop.f32.mrf.mxu0 }
 0x527   : > { %v1395_v62 = vcombine.low %v1251_v53, %v1343_v61  ;;  %v1396_v26 = vcombine.high %v1251_v53, %v1343_v61  ;;  %v1578_v61 = vunpack.c.l.bf16 %v2355_v9 }
 0x528   : > { %v1840_v63 = vpop.f32.mrf.mxu0  ;;  %v1389_v1 = vpop.f32.mrf.mxu1 }
 0x529   : > { %v1411_v2 = vcombine.low %v1297_v55, %v1389_v1  ;;  %v1412_v27 = vcombine.high %v1297_v55, %v1389_v1  ;;  %v1403_v5 = vrot.slane %v1395_v62, %v2381_v41  ;;  %v1410_v6 = vrot.slane %v1396_v26, %v2381_v41 }
 0x52a   : > { %v1346_v3 = vpop.f32.mrf.mxu0  ;;  %v1846_v4 = vpop.f32.mrf.mxu1 }
 0x52b   : > { %v1419_v7 = vrot.slane %v1411_v2, %v2381_v41  ;;  %v1426_v8 = vrot.slane %v1412_v27, %v2381_v41 }
 0x52c   : > { %v1841_v10 = vpop.f32.mrf.mxu0  ;;  %v1392_v11 = vpop.f32.mrf.mxu1 }
 0x52d   : > { %v1427_v12 = vcombine.low %v1403_v5, %v1419_v7  ;;  %v1428_v13 = vcombine.high %v1403_v5, %v1419_v7  ;;  %v1443_v14 = vcombine.low %v1410_v6, %v1426_v8  ;;  %v1444_v15 = vcombine.high %v1410_v6, %v1426_v8 }
 0x52e   : > { %v1847_v16 = vpop.f32.mrf.mxu1 }
 0x52f   : > { %v1435_v18 = vrot.slane %v1427_v12, %v2387_v45  ;;  %v1442_v20 = vrot.slane %v1428_v13, %v2387_v45  ;;  %v1451_v29 = vrot.slane %v1443_v14, %v2387_v45  ;;  %v1458_v21 = vrot.slane %v1444_v15, %v2387_v45 }
 0x531   : > { %v1463_v22 = vcombine.low %v1435_v18, %v1442_v20  ;;  %v1742_v23 = vcombine.high %v1435_v18, %v1442_v20  ;;  %v1479_v24 = vcombine.low %v1451_v29, %v1458_v21  ;;  %v1743_v25 = vcombine.high %v1451_v29, %v1458_v21 }
 0x533   : > { %v1470_v43 = vrot.slane %v1463_v22, %v2381_v41  ;;  %v1478_v50 = vrot.slane %v1742_v23, %v2381_v41  ;;  %v1486_v44 = vrot.slane %v1479_v24, %v2381_v41  ;;  %v1494_v28 = vrot.slane %v1743_v25, %v2381_v41 }
 0x535   : > { %v1496_v30 = vcombine.high %v1470_v43, %v1478_v50  ;;  %v1512_v31 = vcombine.high %v1486_v44, %v1494_v28  ;;  %v1495_v32 = vcombine.low %v1470_v43, %v1478_v50  ;;  %v1511_v33 = vcombine.low %v1486_v44, %v1494_v28 }
 0x537   : > { %v1510_v34 = vrot.slane %v1496_v30, %v2387_v45  ;;  %v1526_v35 = vrot.slane %v1512_v31, %v2387_v45  ;;  %v1503_v36 = vrot.slane %v1495_v32, %v2387_v45  ;;  %v1519_v37 = vrot.slane %v1511_v33, %v2387_v45 }
 0x539   : > { %v1529_v38 = vcombine.low %v1510_v34, %v1526_v35  ;;  %v1528_v17 = vcombine.high %v1503_v36, %v1519_v37  ;;  %v1527_v56 = vcombine.low %v1503_v36, %v1519_v37  ;;  %v1530_v41 = vcombine.high %v1510_v34, %v1526_v35 }
 0x53b   : > { %1536 = vrot.lane.b32.xlu1 %v1529_v38, %s2156_s2  ;;  %1532 = vrot.lane.b32.xlu0 %v1528_v17, %s2157_s7  ;;  %s2056_s2 = sshll.u32 %s2159_s10, 4  ;;  %s2057_s2 = int_to_ptr.vmem [resolvable:$false] %s2056_s2 }
 0x53c   : > { %s2058_s21 = scalar_lea.vmem %s2057_s2, 128  ;;  %p2059_p10 = scmp.lt.s32.totalorder %s1599_s28, %s2057_s2 }
 0x53d   : > { %p2060_p5 = scmp.lt.s32.totalorder %s2058_s21, %s2052_s26 }
 0x53f   : > { %1540 = vrot.lane.b32.xlu0 %v1530_v41, %s2158_s17  ;;  %p2061_p7 = por %p2060_p5, %p2059_p10 }
 0x541   : > { %p2062_p3 = pnand %p2061_p7, %p2055_p8 }
 0x5ad   : > { %v1533_v39 = vpop.permute.xlu0 %1532  ;;  %v1537_v19 = vpop.permute.xlu1 %1536 }
 0x5ae   : > { %v1543_v40 = vsel %vm976_vm2, %v1527_v56, %v1533_v39 }
 0x5af   : > { %v1545_v46 = vsel %vm1544_vm5, %v1543_v40, %v1537_v19 }
 0x5b1   : > { %v1541_v42 = vpop.permute.xlu0 %1540 }
 0x5b2   : > { %v1547_v47 = vsel %vm1546_vm6, %v1545_v46, %v1541_v42 }
 0x5b3   : > { %v1548_v45 = vsel %vm343_vm1, %v1547_v47, 0.0 }
 0x5b4   : > { %1549 = vadd.xlane.f32.xlu1 %v1548_v45 }
 0x63d   : > { %v1550_v48 = vpop.xlane.xlu1 %1549 }
 0x63e   : > { %v1552_v49 = vmul.f32 0.015625, %v1550_v48 }
 0x640   : > { %v1553_v51 = vsub.f32 %v1547_v47, %v1552_v49 }
 0x642   : > { %v1554_v52 = vmul.f32 %v1553_v51, %v1553_v51 }
 0x644   : > { %v1555_v53 = vsel %vm343_vm1, %v1554_v52, 0.0 }
 0x645   : > { %1556 = vadd.xlane.f32.xlu0 %v1555_v53 }
 0x6ce   : > { %v1557_v54 = vpop.xlane.xlu0 %1556 }
 0x6cf   : > { %v1558_v55 = vmul.f32 0.015625, %v1557_v54 }
 0x6d1   : > { %v1559_v0 = vadd.f32 1e-05, %v1558_v55 }
 0x6d3   : > { %1968 = vrsqrt.f32 %v1559_v0 }
 0x6e0   : > { %v1969_v57 = vpop.eup %1968 }
 0x6e1   : > { %v1561_v59 = vmul.f32 %v1969_v57, %v1553_v51 }
 0x6e3   : > { %v1569_v62 = vmul.f32 %v1744_v58, %v1561_v59 }
 0x6e5   : > { %v1577_v26 = vadd.f32 %v1745_v60, %v1569_v62 }
 0x6e7   : > { %v1579_v63 = vadd.f32 %v1578_v61, %v1577_v26 }
 0x6e9   : > { %v1580_v1 = vpack.c.bf16 %v1579_v63, %v1579_v63 }
 0x6eb   : > { %1582 = vst.msk [vmem:[%s307_s11] sm:$0xf] %vm1581_vm7, %v1580_v1 }
 0x6ec   : > { %2065 = shalt.err (!%p2062_p3)
}
 0x6ed   : > { %s2066_s25 = scalar_lea.hbm %s1596_s16, 64  ;;  %s2070_s17 = scalar_lea.hbm %s2593_s5, 128 }
 0x6ee   : > { %p2067_p2 = scmp.ne.s32.totalorder %s1596_s16, %s2066_s25  ;;  %p2071_p12 = scmp.lt.s32.totalorder %s1596_s16, %s2593_s5 }
 0x6ef   : > { %p2072_p13 = scmp.lt.s32.totalorder %s2070_s17, %s2066_s25 }
 0x6f0   : > { %p2068_p6 = pnand %p2067_p2, %p2273_p0 }
 0x6f1   : > { %p2073_p11 = por %p2072_p13, %p2071_p12 }
 0x6f2   : > { %p2069_p9 = pneg %p2068_p6 }
 0x6f4   : > { %p2074_p1 = pnand %p2073_p11, %p2069_p9 }
 0x6f6   : > { %2077 = shalt.err (!%p2074_p1)
}
 0x6f7   : > { %1856 = dma.vmem_to_hbm [thread:$0]  (%p2273_p0), %s1599_s28, 64, %s1596_s16, %s1584_s24  }
 0x6f8 PF: > { %s1610_s8 = sand.u32 1, %s2120_s18   ;;  %p2608_p4 = scmp.ne.s32.totalorder %s2599_s27, 0 }
 0x6f9   : > { %p2609_p8 = scmp.ge.s32.totalorder %s2140_s23, 2  ;;  %s1611_s6 = scalar_lea.sflag [#allocation4], %s1610_s8 }
 0x6fb   : > { %p1870_p10 = pnand %p2609_p8, %p2608_p4 }
 0x6fd   : > { %p1871_p5 = pneg %p1870_p10 }
 0x6ff   : > { %2115 = dma.done.wait (%p1871_p5), %s1611_s6, 64  }
 0x700   : > { %2117 = vsyncadd (%p1871_p5), %s1611_s6, 4294967232  ;;  %s24_s23 = sadd.s32 1, %s2140_s23   ;;  %s2610_s21 = sld [smem:[#allocation13_spill]] }
 0x701   : > { %p21_p7 = scmp.ge.s32.totalorder %s24_s23, 4   ;;  %s2611_s22 = sld [smem:[#allocation14_spill]] }
 0x702   : > { %s2612_s18 = smov %s2124_s19  ;;  %s2613_s19 = smov %s2128_s20 }
 0x703   : > { %s2614_s20 = smov %s2282_s29  ;;  %23 = sbr.rel (!%p21_p7) target bundleno = 10 (0xa), region = 102 }
 0x708   :  { %1616 = vsyncpa [#allocation3], 1 }
 0x709   :  { %1618 = vsyncpa [#allocation3 + $0x1], 1 }
 0x70a   :  { %1619 = vsyncpa [#allocation6], 1 }
 0x70b   :  { %1621 = vsyncpa [#allocation6 + $0x1], 1 }
 0x70c   :  { %1622 = vsyncpa [#allocation4], 1 }
 0x70d   :  { %1624 = vsyncpa [#allocation4 + $0x1], 1 }

</bundles_post_ra>
